<compile_context>
chip_gen: v7x
topology: tpu7x:2x2x1
jax: 0.10.0
libtpu: 0.0.40
codegen_flags: <defaults>
</compile_context>

<pallas_src>
import jax
import jax.numpy as jnp
from jax.experimental import pallas as pl
from jax.experimental.pallas import tpu as pltpu

INPUT_SIZE = 64     # stands in for X.shape[1] (piece + flattened board + state + action)
HIDDEN_SIZE = 256
OUTPUT_SIZE = 1


def _round_up(n, m):
    return ((n + m - 1) // m) * m


def qnetwork_kernel(x_ref, w1_ref, b1_ref, w2_ref, b2_ref, w3_ref, b3_ref, o_ref):
    # fc1 + ReLU: bf16 operands on the MXU, f32 accumulate, f32 bias/ReLU.
    h1 = jnp.dot(x_ref[...], w1_ref[...], preferred_element_type=jnp.float32)
    h1 = jnp.maximum(h1 + b1_ref[...], 0.0)

    # dropout(0.2) -> identity at inference

    # fc2 + ReLU: re-cast activation to bf16 for the MXU, accumulate in f32.
    h2 = jnp.dot(h1.astype(jnp.bfloat16), w2_ref[...],
                 preferred_element_type=jnp.float32)
    h2 = jnp.maximum(h2 + b2_ref[...], 0.0)

    # fc3 (output width 1): VPU multiply + lane reduction instead of an N=1
    # MXU matmul (avoids a nearly-empty MXU pass and the lane-sparse store path).
    out = jnp.sum(h2 * w3_ref[...], axis=-1, keepdims=True) + b3_ref[...]
    o_ref[...] = out.astype(o_ref.dtype)


def qnetwork_forward(x, params, *, tb=256):
    """x: [B, INPUT_SIZE] float32 -> [B, OUTPUT_SIZE] float32."""
    w1, b1, w2, b2, w3, b3 = params
    B, F = x.shape
    H = w1.shape[1]

    # Batch tile: big enough to amortize per-step overhead / give the MXU a
    # full M dimension, small enough for vregs + v7x's 64 MiB VMEM.
    TB = min(tb, _round_up(B, 8))
    B_pad = _round_up(B, TB)
    if B_pad != B:
        x = jnp.pad(x, ((0, B_pad - B), (0, 0)))

    # bf16 matmul operands, f32 everything else (bias, ReLU, fc3 reduction).
    x_bf = x.astype(jnp.bfloat16)
    w1_bf = w1.astype(jnp.bfloat16)
    w2_bf = w2.astype(jnp.bfloat16)
    w3_row = w3.reshape(1, H).astype(jnp.float32)           # used on VPU in f32
    b3_2d = b3.reshape(1, OUTPUT_SIZE).astype(jnp.float32)

    grid = (B_pad // TB,)
    # Weights/biases: same block for every grid step -> stay VMEM-resident.
    resident = lambda shape: pl.BlockSpec(shape, lambda i: (0, 0))

    out = pl.pallas_call(
        qnetwork_kernel,
        out_shape=jax.ShapeDtypeStruct((B_pad, OUTPUT_SIZE), jnp.float32),
        grid_spec=pl.GridSpec(
            grid=grid,
            in_specs=[
                pl.BlockSpec((TB, F), lambda i: (i, 0)),        # x: tiled over batch
                resident((F, H)), resident((1, H)),             # fc1 W, b
                resident((H, H)), resident((1, H)),             # fc2 W, b
                resident((1, H)), resident((1, OUTPUT_SIZE)),   # fc3 row, b
            ],
            out_specs=pl.BlockSpec((TB, OUTPUT_SIZE), lambda i: (i, 0)),
        ),
        compiler_params=pltpu.CompilerParams(
            dimension_semantics=("parallel",),  # shard batch tiles across TCs on v7x
        ),
    )(x_bf, w1_bf, b1, w2_bf, b2, w3_row, b3_2d)

    return out[:B]


def init_params(key):
    """Deterministic Kaiming-uniform-like init matching nn.Linear shapes.

    Weights stored transposed: W1 [F, H], W2 [H, H], W3 [H, 1].
    Biases stored as [1, H] / [1, 1] for in-kernel row broadcast.
    """
    k1, k2, k3, k4, k5, k6 = jax.random.split(key, 6)

    def lin_init(kw, kb, fan_in, fan_out):
        bound = 1.0 / jnp.sqrt(fan_in)
        w = jax.random.uniform(kw, (fan_in, fan_out), jnp.float32, -bound, bound)
        b = jax.random.uniform(kb, (1, fan_out), jnp.float32, -bound, bound)
        return w, b

    w1, b1 = lin_init(k1, k2, INPUT_SIZE, HIDDEN_SIZE)
    w2, b2 = lin_init(k3, k4, HIDDEN_SIZE, HIDDEN_SIZE)
    w3, b3 = lin_init(k5, k6, HIDDEN_SIZE, OUTPUT_SIZE)
    return w1, b1, w2, b2, w3, b3


def qnetwork_ref_f32(x, params):
    """Pure-f32 JAX reference (PyTorch-equivalent math)."""
    w1, b1, w2, b2, w3, b3 = params
    h1 = jnp.maximum(x @ w1 + b1, 0.0)
    h2 = jnp.maximum(h1 @ w2 + b2, 0.0)
    return h2 @ w3 + b3


def qnetwork_ref_bf16(x, params):
    """Precision-matched JAX reference (bf16 matmul operands, f32 accumulate)."""
    w1, b1, w2, b2, w3, b3 = params
    h1 = jnp.dot(x.astype(jnp.bfloat16), w1.astype(jnp.bfloat16),
                 preferred_element_type=jnp.float32)
    h1 = jnp.maximum(h1 + b1, 0.0)
    h2 = jnp.dot(h1.astype(jnp.bfloat16), w2.astype(jnp.bfloat16),
                 preferred_element_type=jnp.float32)
    h2 = jnp.maximum(h2 + b2, 0.0)
    return jnp.sum(h2 * w3.reshape(1, -1), axis=-1, keepdims=True) + b3.reshape(1, 1)


if __name__ == "__main__":
    key = jax.random.PRNGKey(0)
    kx, kp = jax.random.split(key)
    params = init_params(kp)

    # Primary small case (single grid step).
    B = 8
    x = jax.random.normal(kx, (B, INPUT_SIZE), jnp.float32)
    out = jax.block_until_ready(qnetwork_forward(x, params))
    assert out.shape == (B, OUTPUT_SIZE), out.shape
    assert jnp.allclose(out, qnetwork_ref_bf16(x, params), atol=1e-3, rtol=1e-3), \
        "mismatch vs precision-matched reference"
    assert jnp.allclose(out, qnetwork_ref_f32(x, params), atol=3e-2, rtol=3e-2), \
        "mismatch vs f32 reference"

    # Secondary case: exercises batch tiling + tail padding (300 -> 2 steps of 256).
    B2 = 300
    x2 = jax.random.normal(jax.random.PRNGKey(1), (B2, INPUT_SIZE), jnp.float32)
    out2 = jax.block_until_ready(qnetwork_forward(x2, params))
    assert out2.shape == (B2, OUTPUT_SIZE), out2.shape
    assert jnp.allclose(out2, qnetwork_ref_bf16(x2, params), atol=1e-3, rtol=1e-3), \
        "mismatch vs precision-matched reference (tiled batch)"
    assert jnp.allclose(out2, qnetwork_ref_f32(x2, params), atol=3e-2, rtol=3e-2), \
        "mismatch vs f32 reference (tiled batch)"

    print("KERNEL_OK")
</pallas_src>

<mosaic_0001>
module attributes {stable_mosaic.version = 11 : i64} {
  func.func @qnetwork_kernel(%arg0: i32, %arg1: memref<8x64xbf16, #tpu.memory_space<vmem>>, %arg2: memref<64x256xbf16, #tpu.memory_space<vmem>>, %arg3: memref<1x256xf32, #tpu.memory_space<vmem>>, %arg4: memref<256x256xbf16, #tpu.memory_space<vmem>>, %arg5: memref<1x256xf32, #tpu.memory_space<vmem>>, %arg6: memref<1x256xf32, #tpu.memory_space<vmem>>, %arg7: memref<1x1xf32, #tpu.memory_space<vmem>>, %arg8: memref<8x1xf32, #tpu.memory_space<vmem>>) attributes {dimension_semantics = [#tpu.dimension_semantics<parallel>], iteration_bounds = array<i64: 1>, scalar_prefetch = 0 : i64, scratch_operands = 0 : i64, tpu.core_type = #tpu.core_type<tc>, window_params = [{transform_indices = @transform_0, window_bounds = array<i64: 8, 64>}, {pipeline_mode = #tpu.pipeline_mode<synchronous>, transform_indices = @transform_1, window_bounds = array<i64: 64, 256>}, {pipeline_mode = #tpu.pipeline_mode<synchronous>, transform_indices = @transform_2, window_bounds = array<i64: 1, 256>}, {pipeline_mode = #tpu.pipeline_mode<synchronous>, transform_indices = @transform_3, window_bounds = array<i64: 256, 256>}, {pipeline_mode = #tpu.pipeline_mode<synchronous>, transform_indices = @transform_4, window_bounds = array<i64: 1, 256>}, {pipeline_mode = #tpu.pipeline_mode<synchronous>, transform_indices = @transform_5, window_bounds = array<i64: 1, 256>}, {pipeline_mode = #tpu.pipeline_mode<synchronous>, transform_indices = @transform_6, window_bounds = array<i64: 1, 1>}, {transform_indices = @transform_7, window_bounds = array<i64: 8, 1>}]} {
    %c0 = arith.constant 0 : index
    %c0_0 = arith.constant 0 : index
    %0 = vector.load %arg1[%c0, %c0_0] : memref<8x64xbf16, #tpu.memory_space<vmem>>, vector<8x64xbf16>
    %c0_1 = arith.constant 0 : index
    %c0_2 = arith.constant 0 : index
    %1 = vector.load %arg2[%c0_1, %c0_2] : memref<64x256xbf16, #tpu.memory_space<vmem>>, vector<64x256xbf16>
    %cst = arith.constant dense<0.000000e+00> : vector<8x256xf32>
    %2 = tpu.matmul %0, %1, %cst {dimension_numbers = #tpu.dot_dimension_numbers<[1], [0], [0], [1], [0, 0, 1, 1], [], []>} : vector<8x64xbf16>, vector<64x256xbf16>, vector<8x256xf32> -> vector<8x256xf32>
    %c0_3 = arith.constant 0 : index
    %c0_4 = arith.constant 0 : index
    %3 = vector.load %arg3[%c0_3, %c0_4] : memref<1x256xf32, #tpu.memory_space<vmem>>, vector<1x256xf32>
    %4 = vector.broadcast %3 : vector<1x256xf32> to vector<8x256xf32>
    %5 = arith.addf %2, %4 : vector<8x256xf32>
    %cst_5 = arith.constant 0.000000e+00 : f32
    %6 = vector.broadcast %cst_5 : f32 to vector<8x256xf32>
    %7 = arith.maximumf %5, %6 : vector<8x256xf32>
    %8 = arith.truncf %7 : vector<8x256xf32> to vector<8x256xbf16>
    %c0_6 = arith.constant 0 : index
    %c0_7 = arith.constant 0 : index
    %9 = vector.load %arg4[%c0_6, %c0_7] : memref<256x256xbf16, #tpu.memory_space<vmem>>, vector<256x256xbf16>
    %cst_8 = arith.constant dense<0.000000e+00> : vector<8x256xf32>
    %10 = tpu.matmul %8, %9, %cst_8 {dimension_numbers = #tpu.dot_dimension_numbers<[1], [0], [0], [1], [0, 0, 1, 1], [], []>} : vector<8x256xbf16>, vector<256x256xbf16>, vector<8x256xf32> -> vector<8x256xf32>
    %c0_9 = arith.constant 0 : index
    %c0_10 = arith.constant 0 : index
    %11 = vector.load %arg5[%c0_9, %c0_10] : memref<1x256xf32, #tpu.memory_space<vmem>>, vector<1x256xf32>
    %12 = vector.broadcast %11 : vector<1x256xf32> to vector<8x256xf32>
    %13 = arith.addf %10, %12 : vector<8x256xf32>
    %cst_11 = arith.constant 0.000000e+00 : f32
    %14 = vector.broadcast %cst_11 : f32 to vector<8x256xf32>
    %15 = arith.maximumf %13, %14 : vector<8x256xf32>
    %c0_12 = arith.constant 0 : index
    %c0_13 = arith.constant 0 : index
    %16 = vector.load %arg6[%c0_12, %c0_13] : memref<1x256xf32, #tpu.memory_space<vmem>>, vector<1x256xf32>
    %17 = vector.broadcast %16 : vector<1x256xf32> to vector<8x256xf32>
    %18 = arith.mulf %15, %17 : vector<8x256xf32>
    %cst_14 = arith.constant dense<0.000000e+00> : vector<8xf32>
    %19 = vector.multi_reduction <add>, %18, %cst_14 [1] : vector<8x256xf32> to vector<8xf32>
    %20 = vector.shape_cast %19 : vector<8xf32> to vector<8x1xf32>
    %c0_15 = arith.constant 0 : index
    %c0_16 = arith.constant 0 : index
    %21 = vector.load %arg7[%c0_15, %c0_16] : memref<1x1xf32, #tpu.memory_space<vmem>>, vector<1x1xf32>
    %22 = vector.broadcast %21 : vector<1x1xf32> to vector<8x1xf32>
    %23 = arith.addf %20, %22 : vector<8x1xf32>
    %c0_17 = arith.constant 0 : index
    %c0_18 = arith.constant 0 : index
    %24 = vector.load %arg8[%c0_17, %c0_18] : memref<8x1xf32, #tpu.memory_space<vmem>>, vector<8x1xf32>
    tpu.vector_store %arg8[%c0_17, %c0_18], %23 {strides = array<i32>} : memref<8x1xf32, #tpu.memory_space<vmem>>, vector<8x1xf32>,
    return
  }
  func.func @transform_0(%arg0: i32) -> (i32, i32) {
    %c0_i32 = arith.constant 0 : i32
    %c0_i32_0 = arith.constant 0 : i32
    return %arg0, %c0_i32 : i32, i32
  }
  func.func @transform_1(%arg0: i32) -> (i32, i32) {
    %c0_i32 = arith.constant 0 : i32
    %c0_i32_0 = arith.constant 0 : i32
    %c0_i32_1 = arith.constant 0 : i32
    return %c0_i32, %c0_i32_0 : i32, i32
  }
  func.func @transform_2(%arg0: i32) -> (i32, i32) {
    %c0_i32 = arith.constant 0 : i32
    %c0_i32_0 = arith.constant 0 : i32
    %c0_i32_1 = arith.constant 0 : i32
    return %c0_i32, %c0_i32_0 : i32, i32
  }
  func.func @transform_3(%arg0: i32) -> (i32, i32) {
    %c0_i32 = arith.constant 0 : i32
    %c0_i32_0 = arith.constant 0 : i32
    %c0_i32_1 = arith.constant 0 : i32
    return %c0_i32, %c0_i32_0 : i32, i32
  }
  func.func @transform_4(%arg0: i32) -> (i32, i32) {
    %c0_i32 = arith.constant 0 : i32
    %c0_i32_0 = arith.constant 0 : i32
    %c0_i32_1 = arith.constant 0 : i32
    return %c0_i32, %c0_i32_0 : i32, i32
  }
  func.func @transform_5(%arg0: i32) -> (i32, i32) {
    %c0_i32 = arith.constant 0 : i32
    %c0_i32_0 = arith.constant 0 : i32
    %c0_i32_1 = arith.constant 0 : i32
    return %c0_i32, %c0_i32_0 : i32, i32
  }
  func.func @transform_6(%arg0: i32) -> (i32, i32) {
    %c0_i32 = arith.constant 0 : i32
    %c0_i32_0 = arith.constant 0 : i32
    %c0_i32_1 = arith.constant 0 : i32
    return %c0_i32, %c0_i32_0 : i32, i32
  }
  func.func @transform_7(%arg0: i32) -> (i32, i32) {
    %c0_i32 = arith.constant 0 : i32
    %c0_i32_0 = arith.constant 0 : i32
    return %arg0, %c0_i32 : i32, i32
  }
}

</mosaic_0001>

<bundles_post_ra>
// kernel: tpu_custom_call.1
= control target key start
LH: loop header
LB: loop body
LE: loop exit
PB: predicated region body
PF: predicated region fallthrough
CT: control target
= control target key end

     0   :  { %s739_s0 = inlined_call_operand.hbm [shape: bf16[8,64], index: 0, kind: input, shape index: {}]   ;;  %s740_s1 = inlined_call_operand.hbm [shape: bf16[64,256], index: 1, kind: input, shape index: {}]   ;;  %s741_s2 = inlined_call_operand.vmem [shape: f32[1,256], index: 2, kind: input, shape index: {}]   ;;  %s742_s3 = inlined_call_operand.hbm [shape: bf16[256,256], index: 3, kind: input, shape index: {}]   ;;  %s743_s4 = inlined_call_operand.vmem [shape: f32[1,256], index: 4, kind: input, shape index: {}]   ;;  %s744_s5 = inlined_call_operand.vmem [shape: f32[1,256], index: 5, kind: input, shape index: {}]   ;;  %s745_s6 = inlined_call_operand.<no memory space> [shape: f32[1,1], index: 6, kind: input, shape index: {}]   ;;  %s746_s7 = inlined_call_operand.vmem [shape: f32[8,1], index: 7, kind: output, shape index: {}]  }
   0x1   :  { %v12_v0 = vstv %s745_s6 }
   0x2   :  { %13 = vst [vmem:[#allocation2] sm:$0x1] %v12_v0 }
   0x3   :  { %14 = vsyncpa [#allocation4], 0 }
   0x4   :  { %15 = vsyncpa [#allocation6], 0  ;;  %s636_s26 = smov [#allocation5]   ;;  %s566_s30 = scalar_lea.hbm %s740_s1, 1024 }
   0x5   :  { %s31_s27 = sshll.u32 %s636_s26, 4  ;;  %p567_p0 = scmp.ne.s32.totalorder %s740_s1, %s566_s30  ;;  %s32_s27 = int_to_ptr.vmem [resolvable:$true] %s31_s27 }
   0x6   :  { %p570_p1 = scmp.lt.u32.totalorder %s566_s30, %s740_s1 }
   0x8   :  { %p572_p2 = pnand %p570_p1, %p567_p0 }
   0xa   :  { %575 = shalt.err (!%p572_p2)
}
   0xb   :  { %s576_s6 = scalar_lea.vmem %s32_s27, 1024  ;;  %p581_p4 = scmp.lt.s32.totalorder %s32_s27, %s32_s27 }
   0xc   :  { %p577_p3 = scmp.ne.s32.totalorder %s32_s27, %s576_s6  ;;  %p582_p5 = scmp.lt.s32.totalorder %s576_s6, %s576_s6 }
   0xe   :  { %p583_p6 = por %p582_p5, %p581_p4 }
  0x10   :  { %p584_p7 = pnand %p583_p6, %p577_p3 }
  0x12   :  { %587 = shalt.err (!%p584_p7)
}
  0x13   :  { %s637_s12 = smov 128   ;;  %s638_s13 = smov 8  }
  0x14   :  { %37 = dma.hbm_to_vmem [thread:$0]  %s740_s1, 1024, %s32_s27, [#allocation6], %s637_s12, %s637_s12, %s638_s13  }
  0x15   :  { %s639_s16 = smov [#allocation3]   ;;  %s640_s18 = smov [#allocation7]  }
  0x16   :  { %s22_s17 = sshll.u32 %s639_s16, 4  ;;  %s45_s19 = sshll.u32 %s640_s18, 4  ;;  %s23_s17 = int_to_ptr.vmem [resolvable:$true] %s22_s17  ;;  %s46_s19 = int_to_ptr.vmem [resolvable:$true] %s45_s19 }
  0x17   :  { %s588_s22 = scalar_lea.hbm %s739_s0, 64 }
  0x18   :  { %p589_p8 = scmp.ne.s32.totalorder %s739_s0, %s588_s22  ;;  %p592_p9 = scmp.lt.u32.totalorder %s588_s22, %s739_s0 }
  0x1a   :  { %p594_p10 = pnand %p592_p9, %p589_p8 }
  0x1c   :  { %597 = shalt.err (!%p594_p10)
}
  0x1d   :  { %s598_s1 = scalar_lea.vmem %s23_s17, 64  ;;  %p603_p12 = scmp.lt.s32.totalorder %s23_s17, %s23_s17 }
  0x1e   :  { %p599_p11 = scmp.ne.s32.totalorder %s23_s17, %s598_s1  ;;  %p604_p13 = scmp.lt.s32.totalorder %s598_s1, %s598_s1 }
  0x20   :  { %p605_p0 = por %p604_p13, %p603_p12 }
  0x22   :  { %p606_p1 = pnand %p605_p0, %p599_p11 }
  0x24   :  { %609 = shalt.err (!%p606_p1)
}
  0x25   :  { %25 = dma.hbm_to_vmem [thread:$0]  %s739_s0, 64, %s23_s17, [#allocation4]  }
  0x26   :  { %s610_s8 = scalar_lea.hbm %s742_s3, 4096 }
  0x27   :  { %p611_p2 = scmp.ne.s32.totalorder %s742_s3, %s610_s8  ;;  %p614_p3 = scmp.lt.u32.totalorder %s610_s8, %s742_s3 }
  0x29   :  { %p616_p4 = pnand %p614_p3, %p611_p2 }
  0x2b   :  { %619 = shalt.err (!%p616_p4)
}
  0x2c   :  { %s620_s14 = scalar_lea.vmem %s46_s19, 4096  ;;  %p625_p6 = scmp.lt.s32.totalorder %s46_s19, %s46_s19 }
  0x2d   :  { %p621_p5 = scmp.ne.s32.totalorder %s46_s19, %s620_s14  ;;  %p626_p7 = scmp.lt.s32.totalorder %s620_s14, %s620_s14 }
  0x2f   :  { %p627_p8 = por %p626_p7, %p625_p6 }
  0x31   :  { %p628_p9 = pnand %p627_p8, %p621_p5 }
  0x33   :  { %631 = shalt.err (!%p628_p9)
}
  0x34   :  { %51 = dma.hbm_to_vmem [thread:$0]  %s742_s3, 4096, %s46_s19, [#allocation6], %s637_s12, %s637_s12, %s638_s13  }
  0x35   :  { %632 = dma.done.wait [#allocation4], 64  }
  0x36   :  { %633 = vsyncadd [#allocation4], 4294967232 }
  0x37   :  { %634 = dma.done.wait [#allocation6], 5120  }
  0x38   :  { %635 = vsyncadd [#allocation6], 4294962176  ;;  %v641_v1 = vmov 0   ;;  %v506_v2 = vld [vmem:[#allocation5 + $0x4] ss:$8 sps:$4 sm:$0xff]   ;;  %vm129_vm0 = vcmask 523264   ;;  %v79_v43 = vlaneseq }
  0x39   :  { %165 = vmatprep.mubr.bf16.mxu0 %v641_v1  ;;  %v508_v3 = vld [vmem:[#allocation5] ss:$8 sps:$4 sm:$0xff]   ;;  %133 = vmatprep.subr.bf16.mxu0 %v506_v2  ;;  %v509_v4 = vld [vmem:[#allocation5 + $0x14] ss:$8 sps:$4 sm:$0xff]   ;;  %v511_v5 = vld [vmem:[#allocation5 + $0x10] ss:$8 sps:$4 sm:$0xff]  }
  0x3a   :  { %134 = vmatpush1.bf16.msra.mxu0 %v508_v3  ;;  %v512_v6 = vld [vmem:[#allocation5 + $0x24] ss:$8 sps:$4 sm:$0xff]   ;;  %v514_v7 = vld [vmem:[#allocation5 + $0x20] ss:$8 sps:$4 sm:$0xff]   ;;  %v521_v10 = vld [vmem:[#allocation7 + $0x14] ss:$8 sps:$4 sm:$0xff]  }
  0x3b   :  { %135 = vmatprep.subr.bf16.mxu0 %v509_v4  ;;  %v518_v8 = vld [vmem:[#allocation7 + $0x4] ss:$8 sps:$4 sm:$0xff]   ;;  %v520_v9 = vld [vmem:[#allocation7] ss:$8 sps:$4 sm:$0xff]   ;;  %v515_v11 = vld [vmem:[#allocation5 + $0x34] ss:$8 sps:$4 sm:$0xff]  }
  0x3c   :  { %382 = vmatprep.subr.bf16.mxu1 %v518_v8  ;;  %v523_v12 = vld [vmem:[#allocation7 + $0x10] ss:$8 sps:$4 sm:$0xff]   ;;  %v524_v13 = vld [vmem:[#allocation7 + $0x24] ss:$8 sps:$4 sm:$0xff]   ;;  %v526_v15 = vld [vmem:[#allocation7 + $0x20] ss:$8 sps:$4 sm:$0xff]  }
  0x3d   :  { %383 = vmatpush1.bf16.msra.mxu1 %v520_v9  ;;  %v517_v14 = vld [vmem:[#allocation5 + $0x30] ss:$8 sps:$4 sm:$0xff]   ;;  %v527_v16 = vld [vmem:[#allocation7 + $0x34] ss:$8 sps:$4 sm:$0xff]   ;;  %v530_v19 = vld [vmem:[#allocation7 + $0x44] ss:$8 sps:$4 sm:$0xff]  }
  0x3e   :  { %136 = vmatpush1.bf16.msra.mxu0 %v511_v5  ;;  %384 = vmatprep.subr.bf16.mxu1 %v521_v10  ;;  %v68_v17 = vld [vmem:[#allocation3] sm:$0xf]  ;;  %v529_v18 = vld [vmem:[#allocation7 + $0x30] ss:$8 sps:$4 sm:$0xff]   ;;  %v532_v20 = vld [vmem:[#allocation7 + $0x40] ss:$8 sps:$4 sm:$0xff]  }
  0x3f   :  { %137 = vmatprep.subr.bf16.mxu0 %v512_v6  ;;  %v533_v21 = vld [vmem:[#allocation7 + $0x54] ss:$8 sps:$4 sm:$0xff]   ;;  %v535_v22 = vld [vmem:[#allocation7 + $0x50] ss:$8 sps:$4 sm:$0xff]   ;;  %v536_v23 = vld [vmem:[#allocation7 + $0x64] ss:$8 sps:$4 sm:$0xff]  }
  0x40   :  { %v538_v24 = vld [vmem:[#allocation7 + $0x60] ss:$8 sps:$4 sm:$0xff]   ;;  %v539_v25 = vld [vmem:[#allocation7 + $0x74] ss:$8 sps:$4 sm:$0xff]   ;;  %v541_v26 = vld [vmem:[#allocation7 + $0x70] ss:$8 sps:$4 sm:$0xff]  }
  0x41   :  { %385 = vmatpush1.bf16.msra.mxu1 %v523_v12  ;;  %v542_v27 = vld [vmem:[#allocation7 + $0x84] ss:$8 sps:$4 sm:$0xff]   ;;  %v544_v28 = vld [vmem:[#allocation7 + $0x80] ss:$8 sps:$4 sm:$0xff]   ;;  %v545_v29 = vld [vmem:[#allocation7 + $0x94] ss:$8 sps:$4 sm:$0xff]  }
  0x42   :  { %138 = vmatpush1.bf16.msra.mxu0 %v514_v7  ;;  %386 = vmatprep.subr.bf16.mxu1 %v524_v13  ;;  %v547_v30 = vld [vmem:[#allocation7 + $0x90] ss:$8 sps:$4 sm:$0xff]   ;;  %v548_v31 = vld [vmem:[#allocation7 + $0xa4] ss:$8 sps:$4 sm:$0xff]   ;;  %v550_v32 = vld [vmem:[#allocation7 + $0xa0] ss:$8 sps:$4 sm:$0xff]  }
  0x43   :  { %139 = vmatprep.subr.bf16.mxu0 %v515_v11  ;;  %v551_v33 = vld [vmem:[#allocation7 + $0xb4] ss:$8 sps:$4 sm:$0xff]   ;;  %v553_v34 = vld [vmem:[#allocation7 + $0xb0] ss:$8 sps:$4 sm:$0xff]   ;;  %v554_v35 = vld [vmem:[#allocation7 + $0xc4] ss:$8 sps:$4 sm:$0xff]  }
  0x44   :  { %v556_v36 = vld [vmem:[#allocation7 + $0xc0] ss:$8 sps:$4 sm:$0xff]   ;;  %v557_v37 = vld [vmem:[#allocation7 + $0xd4] ss:$8 sps:$4 sm:$0xff]   ;;  %v559_v38 = vld [vmem:[#allocation7 + $0xd0] ss:$8 sps:$4 sm:$0xff]  }
  0x45   :  { %387 = vmatpush1.bf16.msra.mxu1 %v526_v15  ;;  %v560_v39 = vld [vmem:[#allocation7 + $0xe4] ss:$8 sps:$4 sm:$0xff]   ;;  %v562_v40 = vld [vmem:[#allocation7 + $0xe0] ss:$8 sps:$4 sm:$0xff]   ;;  %v563_v41 = vld [vmem:[#allocation7 + $0xf4] ss:$8 sps:$4 sm:$0xff]  }
  0x46   :  { %140 = vmatpush1.bf16.msra.mxu0 %v517_v14  ;;  %388 = vmatprep.subr.bf16.mxu1 %v527_v16  ;;  %v565_v42 = vld [vmem:[#allocation7 + $0xf0] ss:$8 sps:$4 sm:$0xff]   ;;  %v80_v44 = vshrl.u32 %v79_v43, 7  ;;  %vm450_vm1 = vcmask 7168  }
  0x47   :  { %v77_v46 = vld [vmem:[%s741_s2] sm:$0x3] }
  0x48   :  { %v81_v45 = vsub.s32 0, %v80_v44  ;;  %v85_v47 = vsub.s32 1, %v80_v44  ;;  %v210_v60 = vld [vmem:[%s743_s4] sm:$0x3] }
  0x49   :  { %466 = vmatmul.mubr.msk.bf16.vlgmr.msra.gmra.mrb[0].mxu0 %vm129_vm0, %v68_v17  ;;  %389 = vmatpush1.bf16.msra.mxu1 %v529_v18  ;;  %v425_v63 = vld [vmem:[%s744_s5] sm:$0x3] }
  0x4a   :  { %390 = vmatprep.subr.bf16.mxu1 %v530_v19  ;;  %v82_v48 = vrot.slane %v77_v46, %v81_v45  ;;  %v86_v49 = vrot.slane %v77_v46, %v85_v47  ;;  %v215_v61 = vrot.slane %v210_v60, %v81_v45  ;;  %v219_v62 = vrot.slane %v210_v60, %v85_v47  ;;  %v499_v13 = vld [vmem:[#allocation2] ss:$0 sm:$0xff] }
  0x4b   :  { %v430_v3 = vrot.slane %v425_v63, %v81_v45  ;;  %v434_v6 = vrot.slane %v425_v63, %v85_v47 }
  0x4d   :  { %391 = vmatpush1.bf16.msra.mxu1 %v532_v20 }
  0x4e   :  { %392 = vmatprep.subr.bf16.mxu1 %v533_v21 }
  0x51   :  { %393 = vmatpush1.bf16.msra.mxu1 %v535_v22 }
  0x52   :  { %394 = vmatprep.subr.bf16.mxu1 %v536_v23 }
  0x55   :  { %395 = vmatpush1.bf16.msra.mxu1 %v538_v24 }
  0x56   :  { %396 = vmatprep.subr.bf16.mxu1 %v539_v25 }
  0x59   :  { %397 = vmatpush1.bf16.msra.mxu1 %v541_v26 }
  0x5a   :  { %398 = vmatprep.subr.bf16.mxu1 %v542_v27 }
  0x5d   :  { %399 = vmatpush1.bf16.msra.mxu1 %v544_v28 }
  0x5e   :  { %400 = vmatprep.subr.bf16.mxu1 %v545_v29 }
  0x61   :  { %401 = vmatpush1.bf16.msra.mxu1 %v547_v30 }
  0x62   :  { %402 = vmatprep.subr.bf16.mxu1 %v548_v31 }
  0x65   :  { %403 = vmatpush1.bf16.msra.mxu1 %v550_v32 }
  0x66   :  { %404 = vmatprep.subr.bf16.mxu1 %v551_v33 }
  0x69   :  { %405 = vmatpush1.bf16.msra.mxu1 %v553_v34 }
  0x6a   :  { %406 = vmatprep.subr.bf16.mxu1 %v554_v35 }
  0x6d   :  { %407 = vmatpush1.bf16.msra.mxu1 %v556_v36 }
  0x6e   :  { %408 = vmatprep.subr.bf16.mxu1 %v557_v37 }
  0x71   :  { %409 = vmatpush1.bf16.msra.mxu1 %v559_v38 }
  0x72   :  { %410 = vmatprep.subr.bf16.mxu1 %v560_v39 }
  0x75   :  { %411 = vmatpush1.bf16.msra.mxu1 %v562_v40 }
  0x76   :  { %412 = vmatprep.subr.bf16.mxu1 %v563_v41 }
  0x79   :  { %413 = vmatpush1.bf16.msra.mxu1 %v565_v42 }
 0x11c   :  { %v167_v50 = vpop.f32.mrb[0].mxu0 }
 0x11d   :  { %v168_v51 = vadd.f32 %v167_v50, %v82_v48  ;;  %v169_v52 = vpop.f32.mrb[1].mxu0 }
 0x11e   :  { %v170_v53 = vadd.f32 %v169_v52, %v86_v49  ;;  %v171_v54 = vpop.f32.mrb[2].mxu0 }
 0x11f   :  { %v174_v55 = vmax.f32 %v168_v51, 0.0  ;;  %v172_v56 = vpop.f32.mrb[3].mxu0 }
 0x120   :  { %v175_v57 = vmax.f32 %v170_v53, 0.0 }
 0x121   :  { %v176_v59 = vpack.c.bf16 %v174_v55, %v174_v55 }
 0x122   :  { %v177_v58 = vpack.c.bf16 %v175_v57, %v175_v57 }
 0x124   :  { %414 = vmatprep.mubr.bf16.mxu1 %v177_v58 }
 0x125   :  { %415 = vmatmul.mubr.bf16.vlgmr.msra.gmra.mrb[0].mxu1 %v176_v59 }
 0x1f8   :  { %v416_v0 = vpop.f32.mrb[0].mxu1 }
 0x1f9   :  { %v417_v1 = vadd.f32 %v416_v0, %v215_v61  ;;  %v418_v2 = vpop.f32.mrb[1].mxu1 }
 0x1fa   :  { %v419_v4 = vadd.f32 %v418_v2, %v219_v62  ;;  %v420_v5 = vpop.f32.mrb[2].mxu1 }
 0x1fb   :  { %v423_v7 = vmax.f32 %v417_v1, 0.0  ;;  %v421_v8 = vpop.f32.mrb[3].mxu1 }
 0x1fc   :  { %v424_v9 = vmax.f32 %v419_v4, 0.0 }
 0x1fd   :  { %v437_v10 = vmul.f32 %v430_v3, %v423_v7 }
 0x1fe   :  { %v438_v11 = vmul.f32 %v434_v6, %v424_v9 }
 0x200   :  { %v439_v12 = vadd.f32 %v438_v11, %v437_v10 }
 0x202   :  { %440 = vadd.xlane.f32.xlu0 %v439_v12 }
 0x28f   :  { %v441_v14 = vpop.xlane.xlu0 %440 }
 0x290   :  { %v449_v15 = vadd.f32 %v499_v13, %v441_v14 }
 0x292   :  { %451 = vst.msk [vmem:[%s746_s7] sm:$0xff] %vm450_vm1, %v449_v15 }
 0x293   :  { %456 = vsyncpa [#allocation4], 1 }
 0x294   :  { %457 = vsyncpa [#allocation6], 1 }

</bundles_post_ra>
